<compile_context>
chip_gen: v7x
topology: tpu7x:2x2x1
jax: 0.10.0
libtpu: 0.0.40
codegen_flags: <defaults>
</compile_context>

<pallas_src>
import numpy as np
import jax
import jax.numpy as jnp
from jax import lax
from jax.experimental import pallas as pl
from jax.experimental.pallas import tpu as pltpu


def _round_up(v, m):
    return int((v + m - 1) // m * m)


# ----------------------------------------------------------------------------
# Static per-tap boundary masks (computed once on the host)
# ----------------------------------------------------------------------------
def _build_tap_masks(H, W, K, pad, P_pad):
    """masks[tap, p] == 1.0 iff output pixel p=(y,x) reads an in-bounds input
    pixel (y+oy, x+ox) for tap (oy, ox) = (i-pad, j-pad); 0 for lane padding."""
    P = H * W
    xs = np.arange(P, dtype=np.int64) % W
    ys = np.arange(P, dtype=np.int64) // W
    masks = np.zeros((K * K, P_pad), np.float32)
    tap = 0
    for i in range(K):
        for j in range(K):
            oy, ox = i - pad, j - pad
            valid = ((xs + ox >= 0) & (xs + ox < W) &
                     (ys + oy >= 0) & (ys + oy < H))
            masks[tap, :P] = valid.astype(np.float32)
            tap += 1
    return masks


def _choose_images_per_block(B, P_pad, max_lanes=4096):
    """Largest divisor of B such that the merged lane axis stays <= max_lanes
    and (when B >= 2) at least two grid steps remain for v7x's two TCs."""
    best = 1
    for bt in range(1, B + 1):
        if B % bt:
            continue
        if bt * P_pad > max_lanes:
            continue
        if B >= 2 and B // bt < 2:
            continue
        best = bt
    return best


# ----------------------------------------------------------------------------
# Pallas kernel
# ----------------------------------------------------------------------------
def make_conv_relu_kernel(W, K, pad, C_pad, Nt):
    """Nt = Bt * P_pad lanes (Bt images merged on the lane axis) per grid step."""

    def kernel(x_ref, w_ref, b_ref, m_ref, o_ref, col_ref):
        x = x_ref[...]                                     # (C_pad, Nt) f32

        tap = 0
        for i in range(K):
            for j in range(K):
                oy, ox = i - pad, j - pad
                off = oy * W + ox                          # flat spatial offset
                if off == 0:
                    shifted = x
                else:
                    # shifted[c, q] = x[c, (q + off) mod Nt]; wrap-around and
                    # cross-image reads land only on mask==0 positions.
                    shifted = pltpu.roll(x, (-off) % Nt, 1)
                # Mask multiply fused with the bf16 cast, written straight into
                # this tap's slab of the bf16 column scratch (no f32 concat,
                # no second full-matrix cast).
                col_ref[tap * C_pad:(tap + 1) * C_pad, :] = (
                    shifted * m_ref[tap:tap + 1, :]).astype(jnp.bfloat16)
                tap += 1

        # Single large-contraction MXU matmul (pre-cast bf16 weights, bf16 col,
        # f32 accumulation).
        acc = jnp.dot(w_ref[...], col_ref[...],
                      preferred_element_type=jnp.float32)  # (O, Nt) f32

        o_ref[...] = jnp.maximum(acc + b_ref[...], 0.0)    # bias + ReLU

    return kernel


# ----------------------------------------------------------------------------
# Wrapper (layout, weight repacking, BlockSpecs, grid)
# ----------------------------------------------------------------------------
def conv_relu_forward(x, w, b):
    """x: (B, C, H, W) f32, w: (O, C, K, K), b: (O,).  Returns (B, O, H, W)."""
    B, C, H, W = x.shape
    O, Cw, K, Kw = w.shape
    assert Cw == C and Kw == K
    pad = K // 2
    # TODO(synk): only stride=1, "same" padding (pad == (K-1)//2) is implemented,
    # matching the module defaults (kernel_size=3, stride=1, padding=1).
    assert 2 * pad == K - 1

    P = H * W
    P_pad = _round_up(P, 128)          # lane-dense unmasked stores for any H, W
    C_pad = _round_up(C, 16)           # bf16 sublane tile = 16 rows -> every
                                       # col-slab store is tile aligned
    KKC = K * K * C_pad
    Bt = _choose_images_per_block(B, P_pad)
    Nt = Bt * P_pad

    # Input -> channels-major, images merged on the lane axis: (C_pad, B*P_pad).
    x_p = jnp.zeros((B, C_pad, P_pad), jnp.float32)
    x_p = x_p.at[:, :C, :P].set(x.reshape(B, C, P).astype(jnp.float32))
    x_flat = jnp.transpose(x_p, (1, 0, 2)).reshape(C_pad, B * P_pad)

    # Weights -> (O, K*K*C_pad), column index tap*C_pad + c, PRE-CAST to bf16.
    w_pad = jnp.zeros((O, C_pad, K, K), jnp.float32).at[:, :C].set(
        w.astype(jnp.float32))
    w_col = jnp.transpose(w_pad, (0, 2, 3, 1)).reshape(O, KKC).astype(jnp.bfloat16)
    b_col = b.astype(jnp.float32)[:, None]                 # (O, 1), exact f32 add
    masks = jnp.asarray(
        np.tile(_build_tap_masks(H, W, K, pad, P_pad), (1, Bt)))  # (K*K, Nt) f32

    kernel = make_conv_relu_kernel(W, K, pad, C_pad, Nt)

    # Rough VMEM budget: double-buffered x/out blocks + bf16 col scratch +
    # resident constants.  Explicit limit stays under v7x's 64 MiB and raises
    # v5e's 16 MiB default scoped cap when shapes grow.
    est = (2 * C_pad * Nt * 4 + 2 * O * Nt * 4 + KKC * Nt * 2
           + O * KKC * 2 + O * 128 * 4 + K * K * Nt * 4)
    vmem_limit = int(min(48 * 1024 * 1024, max(4 * est, 32 * 1024 * 1024)))

    out = pl.pallas_call(
        kernel,
        out_shape=jax.ShapeDtypeStruct((O, B * P_pad), jnp.float32),
        grid_spec=pltpu.PrefetchScalarGridSpec(
            num_scalar_prefetch=0,
            grid=(B // Bt,),                               # Bt images per step
            in_specs=[
                pl.BlockSpec((C_pad, Nt), lambda i: (0, i)),   # x block
                pl.BlockSpec((O, KKC), lambda i: (0, 0)),      # bf16 weights
                pl.BlockSpec((O, 1), lambda i: (0, 0)),        # bias
                pl.BlockSpec((K * K, Nt), lambda i: (0, 0)),   # tap masks
            ],
            out_specs=pl.BlockSpec((O, Nt), lambda i: (0, i)),
            scratch_shapes=[pltpu.VMEM((KKC, Nt), jnp.bfloat16)],  # bf16 im2col
        ),
        compiler_params=pltpu.CompilerParams(
            dimension_semantics=("parallel",),             # v7x megacore split
            vmem_limit_bytes=vmem_limit),
    )(x_flat, w_col, b_col, masks)

    # TODO(synk): output kept in f32 to match the nn.Module dtype; emitting bf16
    # here would halve the dominant HBM writeback if the consumer accepts it.
    out = out.reshape(O, B, P_pad).transpose(1, 0, 2)[:, :, :P]
    return out.reshape(B, O, H, W)

    # TODO(synk): bn=True path (nn.BatchNorm2d) is not implemented; at inference
    # it folds into a per-channel scale/shift fuse-able into w_col / b_col.


# ----------------------------------------------------------------------------
# Pure-JAX reference (mirrors the PyTorch forward: Conv2d + ReLU, bn=False)
# ----------------------------------------------------------------------------
def conv_relu_reference(x, w, b):
    pad = w.shape[2] // 2
    y = lax.conv_general_dilated(
        x, w, window_strides=(1, 1), padding=((pad, pad), (pad, pad)),
        dimension_numbers=("NCHW", "OIHW", "NCHW"))
    return jnp.maximum(y + b[None, :, None, None], 0.0)


# ----------------------------------------------------------------------------
if __name__ == "__main__":
    key = jax.random.PRNGKey(0)
    B, C_in, H, W = 2, 4, 16, 16       # module input: (batch, in_channels, H, W)
    C_out, K = 32, 3                   # Conv(in_channels=4, out_channels=32)

    kx, kw, kb = jax.random.split(key, 3)
    x = jax.random.normal(kx, (B, C_in, H, W), jnp.float32)
    scale = 1.0 / np.sqrt(C_in * K * K)
    w = scale * jax.random.normal(kw, (C_out, C_in, K, K), jnp.float32)
    b = scale * jax.random.normal(kb, (C_out,), jnp.float32)

    out = jax.block_until_ready(conv_relu_forward(x, w, b))
    ref = jax.block_until_ready(conv_relu_reference(x, w, b))

    assert out.shape == (B, C_out, H, W)
    # Tolerance accounts for bf16 MXU operands (f32 accumulation); structural
    # bugs (wrong tap indexing / masking / blocking) would produce O(1) errors.
    if not np.allclose(np.asarray(out), np.asarray(ref), atol=5e-2, rtol=5e-2):
        err = float(jnp.max(jnp.abs(out - ref)))
        raise AssertionError(
            f"Pallas kernel mismatch vs JAX reference (max abs err={err})")

    print("KERNEL_OK")
</pallas_src>

<mosaic_0001>
module attributes {stable_mosaic.version = 11 : i64} {
  func.func @kernel(%arg0: i32, %arg1: memref<16x256xf32, #tpu.memory_space<vmem>>, %arg2: memref<32x144xbf16, #tpu.memory_space<vmem>>, %arg3: memref<32x1xf32, #tpu.memory_space<vmem>>, %arg4: memref<9x256xf32, #tpu.memory_space<vmem>>, %arg5: memref<32x256xf32, #tpu.memory_space<vmem>>, %arg6: memref<144x256xbf16, #tpu.memory_space<vmem>>) attributes {dimension_semantics = [#tpu.dimension_semantics<parallel>], iteration_bounds = array<i64: 2>, scalar_prefetch = 0 : i64, scratch_operands = 1 : i64, tpu.core_type = #tpu.core_type<tc>, window_params = [{transform_indices = @transform_0, window_bounds = array<i64: 16, 256>}, {pipeline_mode = #tpu.pipeline_mode<synchronous>, transform_indices = @transform_1, window_bounds = array<i64: 32, 144>}, {pipeline_mode = #tpu.pipeline_mode<synchronous>, transform_indices = @transform_2, window_bounds = array<i64: 32, 1>}, {pipeline_mode = #tpu.pipeline_mode<synchronous>, transform_indices = @transform_3, window_bounds = array<i64: 9, 256>}, {transform_indices = @transform_4, window_bounds = array<i64: 32, 256>}]} {
    %c0 = arith.constant 0 : index
    %c0_0 = arith.constant 0 : index
    %0 = vector.load %arg1[%c0, %c0_0] : memref<16x256xf32, #tpu.memory_space<vmem>>, vector<16x256xf32>
    %c17_i32 = arith.constant 17 : i32
    %1 = tpu.dynamic_rotate %0 by %c17_i32 dim 1 : vector<16x256xf32>, i32 -> vector<16x256xf32>
    %c0_1 = arith.constant 0 : index
    %c0_2 = arith.constant 0 : index
    %2 = vector.load %arg4[%c0_1, %c0_2] : memref<9x256xf32, #tpu.memory_space<vmem>>, vector<1x256xf32>
    %3 = vector.broadcast %2 : vector<1x256xf32> to vector<16x256xf32>
    %4 = arith.mulf %1, %3 : vector<16x256xf32>
    %5 = arith.truncf %4 : vector<16x256xf32> to vector<16x256xbf16>
    %c0_3 = arith.constant 0 : index
    %c0_4 = arith.constant 0 : index
    %6 = vector.load %arg6[%c0_3, %c0_4] : memref<144x256xbf16, #tpu.memory_space<vmem>>, vector<16x256xbf16>
    tpu.vector_store %arg6[%c0_3, %c0_4], %5 {strides = array<i32>} : memref<144x256xbf16, #tpu.memory_space<vmem>>, vector<16x256xbf16>,
    %c16_i32 = arith.constant 16 : i32
    %7 = tpu.dynamic_rotate %0 by %c16_i32 dim 1 : vector<16x256xf32>, i32 -> vector<16x256xf32>
    %c1 = arith.constant 1 : index
    %c0_5 = arith.constant 0 : index
    %8 = vector.load %arg4[%c1, %c0_5] : memref<9x256xf32, #tpu.memory_space<vmem>>, vector<1x256xf32>
    %9 = vector.broadcast %8 : vector<1x256xf32> to vector<16x256xf32>
    %10 = arith.mulf %7, %9 : vector<16x256xf32>
    %11 = arith.truncf %10 : vector<16x256xf32> to vector<16x256xbf16>
    %c16 = arith.constant 16 : index
    %c0_6 = arith.constant 0 : index
    %12 = vector.load %arg6[%c16, %c0_6] : memref<144x256xbf16, #tpu.memory_space<vmem>>, vector<16x256xbf16>
    tpu.vector_store %arg6[%c16, %c0_6], %11 {strides = array<i32>} : memref<144x256xbf16, #tpu.memory_space<vmem>>, vector<16x256xbf16>,
    %c15_i32 = arith.constant 15 : i32
    %13 = tpu.dynamic_rotate %0 by %c15_i32 dim 1 : vector<16x256xf32>, i32 -> vector<16x256xf32>
    %c2 = arith.constant 2 : index
    %c0_7 = arith.constant 0 : index
    %14 = vector.load %arg4[%c2, %c0_7] : memref<9x256xf32, #tpu.memory_space<vmem>>, vector<1x256xf32>
    %15 = vector.broadcast %14 : vector<1x256xf32> to vector<16x256xf32>
    %16 = arith.mulf %13, %15 : vector<16x256xf32>
    %17 = arith.truncf %16 : vector<16x256xf32> to vector<16x256xbf16>
    %c32 = arith.constant 32 : index
    %c0_8 = arith.constant 0 : index
    %18 = vector.load %arg6[%c32, %c0_8] : memref<144x256xbf16, #tpu.memory_space<vmem>>, vector<16x256xbf16>
    tpu.vector_store %arg6[%c32, %c0_8], %17 {strides = array<i32>} : memref<144x256xbf16, #tpu.memory_space<vmem>>, vector<16x256xbf16>,
    %c1_i32 = arith.constant 1 : i32
    %19 = tpu.dynamic_rotate %0 by %c1_i32 dim 1 : vector<16x256xf32>, i32 -> vector<16x256xf32>
    %c3 = arith.constant 3 : index
    %c0_9 = arith.constant 0 : index
    %20 = vector.load %arg4[%c3, %c0_9] : memref<9x256xf32, #tpu.memory_space<vmem>>, vector<1x256xf32>
    %21 = vector.broadcast %20 : vector<1x256xf32> to vector<16x256xf32>
    %22 = arith.mulf %19, %21 : vector<16x256xf32>
    %23 = arith.truncf %22 : vector<16x256xf32> to vector<16x256xbf16>
    %c48 = arith.constant 48 : index
    %c0_10 = arith.constant 0 : index
    %24 = vector.load %arg6[%c48, %c0_10] : memref<144x256xbf16, #tpu.memory_space<vmem>>, vector<16x256xbf16>
    tpu.vector_store %arg6[%c48, %c0_10], %23 {strides = array<i32>} : memref<144x256xbf16, #tpu.memory_space<vmem>>, vector<16x256xbf16>,
    %c4 = arith.constant 4 : index
    %c0_11 = arith.constant 0 : index
    %25 = vector.load %arg4[%c4, %c0_11] : memref<9x256xf32, #tpu.memory_space<vmem>>, vector<1x256xf32>
    %26 = vector.broadcast %25 : vector<1x256xf32> to vector<16x256xf32>
    %27 = arith.mulf %0, %26 : vector<16x256xf32>
    %28 = arith.truncf %27 : vector<16x256xf32> to vector<16x256xbf16>
    %c64 = arith.constant 64 : index
    %c0_12 = arith.constant 0 : index
    %29 = vector.load %arg6[%c64, %c0_12] : memref<144x256xbf16, #tpu.memory_space<vmem>>, vector<16x256xbf16>
    tpu.vector_store %arg6[%c64, %c0_12], %28 {strides = array<i32>} : memref<144x256xbf16, #tpu.memory_space<vmem>>, vector<16x256xbf16>,
    %c255_i32 = arith.constant 255 : i32
    %30 = tpu.dynamic_rotate %0 by %c255_i32 dim 1 : vector<16x256xf32>, i32 -> vector<16x256xf32>
    %c5 = arith.constant 5 : index
    %c0_13 = arith.constant 0 : index
    %31 = vector.load %arg4[%c5, %c0_13] : memref<9x256xf32, #tpu.memory_space<vmem>>, vector<1x256xf32>
    %32 = vector.broadcast %31 : vector<1x256xf32> to vector<16x256xf32>
    %33 = arith.mulf %30, %32 : vector<16x256xf32>
    %34 = arith.truncf %33 : vector<16x256xf32> to vector<16x256xbf16>
    %c80 = arith.constant 80 : index
    %c0_14 = arith.constant 0 : index
    %35 = vector.load %arg6[%c80, %c0_14] : memref<144x256xbf16, #tpu.memory_space<vmem>>, vector<16x256xbf16>
    tpu.vector_store %arg6[%c80, %c0_14], %34 {strides = array<i32>} : memref<144x256xbf16, #tpu.memory_space<vmem>>, vector<16x256xbf16>,
    %c241_i32 = arith.constant 241 : i32
    %36 = tpu.dynamic_rotate %0 by %c241_i32 dim 1 : vector<16x256xf32>, i32 -> vector<16x256xf32>
    %c6 = arith.constant 6 : index
    %c0_15 = arith.constant 0 : index
    %37 = vector.load %arg4[%c6, %c0_15] : memref<9x256xf32, #tpu.memory_space<vmem>>, vector<1x256xf32>
    %38 = vector.broadcast %37 : vector<1x256xf32> to vector<16x256xf32>
    %39 = arith.mulf %36, %38 : vector<16x256xf32>
    %40 = arith.truncf %39 : vector<16x256xf32> to vector<16x256xbf16>
    %c96 = arith.constant 96 : index
    %c0_16 = arith.constant 0 : index
    %41 = vector.load %arg6[%c96, %c0_16] : memref<144x256xbf16, #tpu.memory_space<vmem>>, vector<16x256xbf16>
    tpu.vector_store %arg6[%c96, %c0_16], %40 {strides = array<i32>} : memref<144x256xbf16, #tpu.memory_space<vmem>>, vector<16x256xbf16>,
    %c240_i32 = arith.constant 240 : i32
    %42 = tpu.dynamic_rotate %0 by %c240_i32 dim 1 : vector<16x256xf32>, i32 -> vector<16x256xf32>
    %c7 = arith.constant 7 : index
    %c0_17 = arith.constant 0 : index
    %43 = vector.load %arg4[%c7, %c0_17] : memref<9x256xf32, #tpu.memory_space<vmem>>, vector<1x256xf32>
    %44 = vector.broadcast %43 : vector<1x256xf32> to vector<16x256xf32>
    %45 = arith.mulf %42, %44 : vector<16x256xf32>
    %46 = arith.truncf %45 : vector<16x256xf32> to vector<16x256xbf16>
    %c112 = arith.constant 112 : index
    %c0_18 = arith.constant 0 : index
    %47 = vector.load %arg6[%c112, %c0_18] : memref<144x256xbf16, #tpu.memory_space<vmem>>, vector<16x256xbf16>
    tpu.vector_store %arg6[%c112, %c0_18], %46 {strides = array<i32>} : memref<144x256xbf16, #tpu.memory_space<vmem>>, vector<16x256xbf16>,
    %c239_i32 = arith.constant 239 : i32
    %48 = tpu.dynamic_rotate %0 by %c239_i32 dim 1 : vector<16x256xf32>, i32 -> vector<16x256xf32>
    %c8 = arith.constant 8 : index
    %c0_19 = arith.constant 0 : index
    %49 = vector.load %arg4[%c8, %c0_19] : memref<9x256xf32, #tpu.memory_space<vmem>>, vector<1x256xf32>
    %50 = vector.broadcast %49 : vector<1x256xf32> to vector<16x256xf32>
    %51 = arith.mulf %48, %50 : vector<16x256xf32>
    %52 = arith.truncf %51 : vector<16x256xf32> to vector<16x256xbf16>
    %c128 = arith.constant 128 : index
    %c0_20 = arith.constant 0 : index
    %53 = vector.load %arg6[%c128, %c0_20] : memref<144x256xbf16, #tpu.memory_space<vmem>>, vector<16x256xbf16>
    tpu.vector_store %arg6[%c128, %c0_20], %52 {strides = array<i32>} : memref<144x256xbf16, #tpu.memory_space<vmem>>, vector<16x256xbf16>,
    %c0_21 = arith.constant 0 : index
    %c0_22 = arith.constant 0 : index
    %54 = vector.load %arg2[%c0_21, %c0_22] : memref<32x144xbf16, #tpu.memory_space<vmem>>, vector<32x144xbf16>
    %c0_23 = arith.constant 0 : index
    %c0_24 = arith.constant 0 : index
    %55 = vector.load %arg6[%c0_23, %c0_24] : memref<144x256xbf16, #tpu.memory_space<vmem>>, vector<144x256xbf16>
    %cst = arith.constant dense<0.000000e+00> : vector<32x256xf32>
    %56 = tpu.matmul %54, %55, %cst {dimension_numbers = #tpu.dot_dimension_numbers<[1], [0], [0], [1], [0, 0, 1, 1], [], []>} : vector<32x144xbf16>, vector<144x256xbf16>, vector<32x256xf32> -> vector<32x256xf32>
    %c0_25 = arith.constant 0 : index
    %c0_26 = arith.constant 0 : index
    %57 = vector.load %arg3[%c0_25, %c0_26] : memref<32x1xf32, #tpu.memory_space<vmem>>, vector<32x1xf32>
    %58 = vector.broadcast %57 : vector<32x1xf32> to vector<32x256xf32>
    %59 = arith.addf %56, %58 : vector<32x256xf32>
    %cst_27 = arith.constant 0.000000e+00 : f32
    %60 = vector.broadcast %cst_27 : f32 to vector<32x256xf32>
    %61 = arith.maximumf %59, %60 : vector<32x256xf32>
    %c0_28 = arith.constant 0 : index
    %c0_29 = arith.constant 0 : index
    %62 = vector.load %arg5[%c0_28, %c0_29] : memref<32x256xf32, #tpu.memory_space<vmem>>, vector<32x256xf32>
    tpu.vector_store %arg5[%c0_28, %c0_29], %61 {strides = array<i32>} : memref<32x256xf32, #tpu.memory_space<vmem>>, vector<32x256xf32>,
    return
  }
  func.func @transform_0(%arg0: i32) -> (i32, i32) {
    %c0_i32 = arith.constant 0 : i32
    %c0_i32_0 = arith.constant 0 : i32
    return %c0_i32, %arg0 : i32, i32
  }
  func.func @transform_1(%arg0: i32) -> (i32, i32) {
    %c0_i32 = arith.constant 0 : i32
    %c0_i32_0 = arith.constant 0 : i32
    %c0_i32_1 = arith.constant 0 : i32
    return %c0_i32, %c0_i32_0 : i32, i32
  }
  func.func @transform_2(%arg0: i32) -> (i32, i32) {
    %c0_i32 = arith.constant 0 : i32
    %c0_i32_0 = arith.constant 0 : i32
    %c0_i32_1 = arith.constant 0 : i32
    return %c0_i32, %c0_i32_0 : i32, i32
  }
  func.func @transform_3(%arg0: i32) -> (i32, i32) {
    %c0_i32 = arith.constant 0 : i32
    %c0_i32_0 = arith.constant 0 : i32
    %c0_i32_1 = arith.constant 0 : i32
    return %c0_i32, %c0_i32_0 : i32, i32
  }
  func.func @transform_4(%arg0: i32) -> (i32, i32) {
    %c0_i32 = arith.constant 0 : i32
    %c0_i32_0 = arith.constant 0 : i32
    return %c0_i32, %arg0 : i32, i32
  }
}

</mosaic_0001>

<bundles_post_ra>
// kernel: tpu_custom_call.1
= control target key start
LH: loop header
LB: loop body
LE: loop exit
PB: predicated region body
PF: predicated region fallthrough
CT: control target
= control target key end

     0   :  { %9 = vsyncpa [#allocation4], 0  ;;  %s1359_s0 = inlined_call_operand.hbm [shape: f32[16,512], index: 0, kind: input, shape index: {}]   ;;  %s1360_s1 = inlined_call_operand.vmem [shape: bf16[32,144], index: 1, kind: input, shape index: {}]   ;;  %s1361_s2 = inlined_call_operand.vmem [shape: f32[32,1], index: 2, kind: input, shape index: {}]   ;;  %s1362_s3 = inlined_call_operand.hbm [shape: f32[9,256], index: 3, kind: input, shape index: {}]   ;;  %s1363_s4 = inlined_call_operand.hbm [shape: f32[32,512], index: 4, kind: output, shape index: {}]  }
   0x1   :  { %11 = vsyncpa [#allocation4 + $0x1], 0 }
   0x2   :  { %12 = vsyncpa [#allocation7], 0 }
   0x3   :  { %13 = vsyncpa [#allocation5], 0 }
   0x4   :  { %15 = vsyncpa [#allocation5 + $0x1], 0  ;;  %s1062_s15 = smov 0   ;;  %s1064_s16 = smov 0  }
   0x5   :  { %s1066_s17 = smov 0   ;;  %s1068_s18 = smov 0  }
   0x6 LB: > { %s1083_s19 = sadd.s32 4294967295, %s1018_s18   ;;  %s769_s20 = sadd.s32 4294967294, %s1018_s18   ;;  %s1018_s18 = sphi %s1068_s18, %s1387_s18   ;;  %s1014_s17 = sphi %s1066_s17, %s1386_s17   ;;  %s1010_s16 = sphi %s1064_s16, %s1385_s16   ;;  %s1006_s15 = sphi %s1062_s15, %s1384_s15  }
   0x7   : > { %s1087_s21 = sadd.s32 1, %s1018_s18   ;;  %s28_s22 = sadd.s32 1, %s1014_s17 }
   0x8   : > { %s25_s23 = ssub.s32 %s1018_s18, %s1087_s21  ;;  %p35_p0 = scmp.ne.s32.totalorder %s1014_s17, %s1010_s16 }
   0x9   : > { %p26_p1 = scmp.eq.s32.totalorder %s25_s23, 0  ;;  %p36_p2 = scmp.eq.s32.totalorder %s1018_s18, 0 }
   0xa   : > { %p41_p3 = scmp.ne.s32.totalorder %s1010_s16, %s1006_s15  ;;  %p1364_p4 = scmp.eq.s32.totalorder %s1083_s19, 0 }
   0xb   : > { %s1099_s24 = scalar_select %p26_p1, %s1014_s17, %s28_s22  }
   0xc   : > { %p1101_p5 = por %p36_p2, %p35_p0  ;;  %p1107_p6 = por %p1364_p4, %p41_p3 }
   0xd   : > { %p128_p7 = scmp.eq.s32.totalorder %s1083_s19, 1  ;;  %p134_p8 = scmp.eq.s32.totalorder %s769_s20, 1 }
   0xe   : > { %s1368_s25 = scalar_select %p1101_p5, 1, 0 }
   0xf   : > { %s1369_s26 = scalar_select %p1107_p6, 1, 0 }
  0x10   : > { %p770_p9 = scmp.ge.s32.totalorder %s1018_s18, 1  ;;  %p141_p10 = scmp.lt.s32.totalorder %s1018_s18, 3 }
  0x11   : > { %p1114_p11 = por %p128_p7, %p35_p0  ;;  %p1118_p12 = por %p134_p8, %p41_p3 }
  0x12   : > { %p1122_p13 = pnand %p770_p9, %p141_p10  ;;  %s1020_s30 = smov [#allocation6]  }
  0x13   : > { %s1370_s27 = scalar_select %p1114_p11, 1, 0 }
  0x14   : > { %s1371_s28 = scalar_select %p1118_p12, 1, 0 }
  0x15   : > { %s1372_s29 = scalar_select %p1122_p13, 1, 0 }
  0x16   : > { %p819_p1 = pneg %p1122_p13  ;;  %s159_s5 = sshll.u32 %s1020_s30, 4  ;;  %s160_s5 = int_to_ptr.vmem [resolvable:$true] %s159_s5 }
  0x17   : > { %s173_s7 = sand.u32 1, %s1014_s17   ;;  %s890_s10 = scalar_lea.hbm %s1362_s3, 512 }
  0x18   : > { %p1130_p2 = pnand %p819_p1, %p1364_p4  ;;  %p891_p7 = scmp.ne.s32.totalorder %s1362_s3, %s890_s10 }
  0x19   : > { %p897_p1 = scmp.lt.u32.totalorder %s890_s10, %s1362_s3 }
  0x1a   : > { %p892_p8 = pneg %p1130_p2 }
  0x1c   : > { %p893_p9 = pnand %p892_p8, %p891_p7 }
  0x1e   : > { %p894_p10 = pneg %p893_p9 }
  0x20   : > { %p899_p4 = pnand %p897_p1, %p894_p10 }
  0x22   : > { %902 = shalt.err (!%p899_p4)
}
  0x23   : > { %s903_s20 = scalar_lea.vmem %s160_s5, 512  ;;  %p911_p11 = scmp.lt.s32.totalorder %s160_s5, %s160_s5 }
  0x24   : > { %p904_p0 = scmp.ne.s32.totalorder %s160_s5, %s903_s20  ;;  %p912_p6 = scmp.lt.s32.totalorder %s903_s20, %s903_s20 }
  0x26   : > { %p906_p3 = pnand %p904_p0, %p892_p8  ;;  %p913_p13 = por %p912_p6, %p911_p11 }
  0x28   : > { %p907_p12 = pneg %p906_p3 }
  0x2a   : > { %p914_p5 = pnand %p913_p13, %p907_p12 }
  0x2c   : > { %917 = shalt.err (!%p914_p5)
}
  0x2d   : > { %s1021_s22 = smov 256   ;;  %s1022_s23 = smov 16  }
  0x2e   : > { %822 = dma.hbm_to_vmem [thread:$0]  (!%p1130_p2), %s1362_s3, 512, %s160_s5, [#allocation7], %s1021_s22, %s1021_s22, %s1022_s23  }
  0x2f   : > { %p1374_p4 = scmp.ne.s32.totalorder %s1368_s25, 0  ;;  %p1375_p0 = scmp.lt.s32.totalorder %s1018_s18, 2 }
  0x30   : > { %s773_s10 = sshll.u32 %s173_s7, 5  ;;  %s791_s11 = sshll.u32 %s1018_s18, 8 }
  0x31   : > { %p1160_p3 = pnand %p1375_p0, %p1374_p4  ;;  %s1168_s6 = scalar_lea.hbm %s1359_s0, %s791_s11 }
  0x32   : > { %s177_s5 = scalar_lea.vmem [#allocation3], %s773_s10  ;;  %s1172_s14 = scalar_lea.sflag [#allocation4], %s173_s7 }
  0x33   : > { %s184_s25 = sshll.u32 %s177_s5, 4  ;;  %s918_s20 = scalar_lea.hbm %s1168_s6, 512  ;;  %s1170_s25 = int_to_ptr.vmem [resolvable:$true] %s184_s25 }
  0x34   : > { %p919_p5 = scmp.ne.s32.totalorder %s1168_s6, %s918_s20  ;;  %p920_p6 = pneg %p1160_p3 }
  0x35   : > { %s923_s11 = scalar_lea.hbm %s1359_s0, 1024  ;;  %p924_p13 = scmp.lt.u32.totalorder %s1168_s6, %s1359_s0 }
  0x36   : > { %p921_p11 = pnand %p920_p6, %p919_p5  ;;  %p925_p2 = scmp.lt.u32.totalorder %s923_s11, %s918_s20 }
  0x37   : > { %p927_p8 = scmp.lt.u32.totalorder %s918_s20, %s1168_s6 }
  0x38   : > { %p922_p12 = pneg %p921_p11  ;;  %p926_p7 = por %p925_p2, %p924_p13 }
  0x3a   : > { %p928_p9 = por %p927_p8, %p926_p7 }
  0x3c   : > { %p929_p10 = pnand %p928_p9, %p922_p12 }
  0x3e   : > { %932 = shalt.err (!%p929_p10)
}
  0x3f   : > { %s933_s7 = scalar_lea.vmem %s1170_s25, 512  ;;  %s1023_s10 = smov [#allocation3]  }
  0x40   : > { %p934_p1 = scmp.ne.s32.totalorder %s1170_s25, %s933_s7  ;;  %s938_s5 = sshll.u32 %s1023_s10, 4  ;;  %s939_s5 = int_to_ptr.vmem [resolvable:$false] %s938_s5 }
  0x41   : > { %s940_s30 = scalar_lea.vmem %s939_s5, 1024  ;;  %p941_p5 = scmp.lt.s32.totalorder %s1170_s25, %s939_s5 }
  0x42   : > { %p936_p4 = pnand %p934_p1, %p920_p6  ;;  %p942_p11 = scmp.lt.s32.totalorder %s940_s30, %s933_s7 }
  0x44   : > { %p937_p0 = pneg %p936_p4  ;;  %p943_p13 = por %p942_p11, %p941_p5 }
  0x46   : > { %p944_p2 = pnand %p943_p13, %p937_p0 }
  0x48   : > { %947 = shalt.err (!%p944_p2)
}
  0x49   : > { %s1024_s20 = smov 512   ;;  %p1377_p6 = scmp.ne.s32.totalorder %s1372_s29, 0 }
  0x4a   : > { %826 = dma.hbm_to_vmem [thread:$0]  (!%p1160_p3), %s1168_s6, 512, %s1170_s25, %s1172_s14, %s1024_s20, %s1021_s22, %s1022_s23  }
  0x4b   : > { %196 = sbr.rel (%p1377_p6) target bundleno = 505 (0x1f9), region = 36  ;;  %s1205_s8 = sand.u32 (!%p1377_p6), 1, %s1010_s16  }
  0x4c   : > { %s777_s11 = sshll.u32 (!%p1377_p6), %s1205_s8, 5  ;;  %s199_s12 = scalar_lea.sflag (!%p1377_p6), [#allocation4], %s1205_s8 }
  0x4d   : > { %s202_s13 = scalar_lea.vmem (!%p1377_p6), [#allocation3], %s777_s11  ;;  %p1378_p12 = scmp.ne.s32.totalorder (!%p1377_p6), %s1369_s26, 0 }
  0x52   : > { %993 = dma.done.wait (%p1378_p12), %s199_s12, 512  }
  0x53   : > { %995 = vsyncadd (%p1378_p12), %s199_s12, 4294966784  ;;  %p1379_p7 = scmp.eq.s32.totalorder %s1083_s19, 0 }
  0x55   : > { %997 = dma.done.wait (%p1379_p7), [#allocation7], 512   ;;  %p1380_p3 = pmov %p1379_p7 }
  0x56   : > { %v1217_v0 = vld [vmem:[%s202_s13 + $0x8] sm:$0xff]  ;;  %v234_v1 = vld [vmem:[%s202_s13] sm:$0xff]  ;;  %s1025_s29 = smov 17   ;;  %v237_v2 = vld [vmem:[%s202_s13 + $0x18] sm:$0xff]  ;;  %s1026_s22 = smov 16   ;;  %v246_v4 = vlaneseq  ;;  %vm596_vm0 = vcmask 130048  }
  0x57   : > { %999 = vsyncadd (%p1380_p3), [#allocation7], 4294966784  ;;  %242 = vrot.lane.b32.xlu1 %v1217_v0, %s1025_s29  ;;  %238 = vrot.lane.b32.xlu0 %v234_v1, %s1025_s29  ;;  %v236_v3 = vld [vmem:[%s202_s13 + $0x10] sm:$0xff]  ;;  %s1027_s26 = smov 15   ;;  %s1028_s23 = smov 1   ;;  %v1033_v19 = vmov 0  }
  0x58   : > { %v256_v5 = vshrl.u32 %v246_v4, 7  ;;  %v376_v8 = vld [vmem:[#allocation6 + $0x4] ss:$8 sm:$0x3]  ;;  %s1029_s9 = smov 127   ;;  %s1030_s6 = smov 113   ;;  %883 = vset.pattern.permute.xlu1 %v1033_v19  ;;  %882 = vset.pattern.permute.xlu0 %v1033_v19 }
  0x59   : > { %s1031_s25 = smov 112   ;;  %v886_v17 = vld [vmem:[%s1360_s1 + $0x4] ss:$8 sps:$4 sm:$0xff]   ;;  %v889_v18 = vld [vmem:[%s1360_s1 + $0x14] ss:$8 sps:$4 sm:$0xff]   ;;  %s1032_s30 = smov 111  }
  0x5a   : > { %v1225_v6 = vsub.s32 1, %v256_v5  ;;  %v1227_v7 = vsub.s32 0, %v256_v5  ;;  %784 = vmatprep.mubr.msk.bf16.mxu0 %vm596_vm0, %v886_v17  ;;  %785 = vmatprep.mubr.msk.bf16.mxu1 %vm596_vm0, %v889_v18  ;;  %v555_v20 = vld [vmem:[%s1361_s2 + $0x8] sm:$0xff]  ;;  %v554_v21 = vld [vmem:[%s1361_s2] sm:$0xff]  ;;  %v556_v22 = vld [vmem:[%s1361_s2 + $0x10] sm:$0xff]  ;;  %v1260_v24 = vand.u32 127, %v246_v4 }
  0x5b   : > { %244 = vrot.lane.b32.xlu1 %v237_v2, %s1025_s29  ;;  %240 = vrot.lane.b32.xlu0 %v236_v3, %s1025_s29  ;;  %v557_v23 = vld [vmem:[%s1361_s2 + $0x18] sm:$0xff]  ;;  %v253_v25 = vld [vmem:[#allocation6] ss:$8 sm:$0x3]  ;;  %s779_s10 = sshll.u32 %s1205_s8, 6  ;;  %s792_s20 = sshll.u32 %s1083_s19, 8 }
  0x5c   : > { %v385_v9 = vrot.slane %v376_v8, %v1225_v6  ;;  %v381_v10 = vrot.slane %v376_v8, %v1227_v7  ;;  %vm248_vm1 = vcmp.lt.s32.totalorder %v1260_v24, 17  ;;  %v258_v28 = vrot.slane %v253_v25, %v1227_v7  ;;  %v287_v40 = vld [vmem:[#allocation6 + $0x1] ss:$8 sm:$0x3]  ;;  %s1297_s5 = scalar_lea.vmem [#allocation8], %s779_s10  ;;  %s1308_s12 = scalar_lea.hbm %s1363_s4, %s792_s20 }
  0x5d   : > { %v262_v29 = vrot.slane %v253_v25, %v1225_v6  ;;  %vm281_vm2 = vcmp.lt.s32.totalorder %v1260_v24, 16  ;;  %v292_v45 = vrot.slane %v287_v40, %v1227_v7  ;;  %v296_v46 = vrot.slane %v287_v40, %v1225_v6  ;;  %v321_v57 = vld [vmem:[#allocation6 + $0x2] ss:$8 sm:$0x3]  ;;  %s673_s13 = scalar_lea.sflag [#allocation5], %s1205_s8  ;;  %p1381_p9 = scmp.ne.s32.totalorder %s1370_s27, 0 }
  0x5e   : > { %v389_v11 = vmul.f32 %v385_v9, %v1217_v0  ;;  %v391_v12 = vmul.f32 %v385_v9, %v237_v2  ;;  %v388_v13 = vmul.f32 %v381_v10, %v234_v1  ;;  %v390_v14 = vmul.f32 %v381_v10, %v236_v3 }
  0x5f   : > { %275 = vrot.lane.b32.xlu1 %v236_v3, %s1026_s22  ;;  %273 = vrot.lane.b32.xlu0 %v234_v1, %s1026_s22  ;;  %vm315_vm3 = vcmp.lt.s32.totalorder %v1260_v24, 15  ;;  %v326_v62 = vrot.slane %v321_v57, %v1227_v7  ;;  %v330_v63 = vrot.slane %v321_v57, %v1225_v6  ;;  %vm349_vm4 = vcmp.lt.s32.totalorder %v1260_v24, 1 }
  0x60   : > { %v1233_v15 = vpack.c.bf16 %v391_v12, %v389_v11  ;;  %v1235_v16 = vpack.c.bf16 %v390_v14, %v388_v13  ;;  %v355_v12 = vld [vmem:[#allocation6 + $0x3] ss:$8 sm:$0x3]  ;;  %vm404_vm5 = vcmp.lt.s32.totalorder %v1260_v24, 127  ;;  %vm438_vm6 = vcmp.lt.s32.totalorder %v1260_v24, 113 }
  0x61   : > { %v360_v19 = vrot.slane %v355_v12, %v1227_v7  ;;  %vm472_vm7 = vcmp.lt.s32.totalorder %v1260_v24, 112  ;;  %vm506_vm8 = vcmp.lt.s32.totalorder %v1260_v24, 111 }
  0x63   : > { %279 = vrot.lane.b32.xlu1 %v237_v2, %s1026_s22  ;;  %277 = vrot.lane.b32.xlu0 %v1217_v0, %s1026_s22 }
  0x67   : > { %309 = vrot.lane.b32.xlu1 %v236_v3, %s1027_s26  ;;  %307 = vrot.lane.b32.xlu0 %v234_v1, %s1027_s26 }
  0x6b   : > { %313 = vrot.lane.b32.xlu1 %v237_v2, %s1027_s26  ;;  %311 = vrot.lane.b32.xlu0 %v1217_v0, %s1027_s26  ;;  %s1034_s26 = smov [#allocation8]  }
  0x6f   : > { %343 = vrot.lane.b32.xlu1 %v236_v3, %s1028_s23  ;;  %341 = vrot.lane.b32.xlu0 %v234_v1, %s1028_s23 }
  0x73   : > { %347 = vrot.lane.b32.xlu1 %v237_v2, %s1028_s23  ;;  %345 = vrot.lane.b32.xlu0 %v1217_v0, %s1028_s23  ;;  %s952_s23 = sshll.u32 %s1034_s26, 4  ;;  %s953_s23 = int_to_ptr.vmem [resolvable:$false] %s952_s23 }
  0x77   : > { %398 = vrot.lane.b32.xlu1 %v236_v3, %s1029_s9  ;;  %396 = vrot.lane.b32.xlu0 %v234_v1, %s1029_s9 }
  0x7b   : > { %402 = vrot.lane.b32.xlu1 %v237_v2, %s1029_s9  ;;  %400 = vrot.lane.b32.xlu0 %v1217_v0, %s1029_s9  ;;  %s954_s9 = scalar_lea.vmem %s953_s23, 2048 }
  0x7f   : > { %432 = vrot.lane.b32.xlu1 %v236_v3, %s1030_s6  ;;  %430 = vrot.lane.b32.xlu0 %v234_v1, %s1030_s6 }
  0x83   : > { %436 = vrot.lane.b32.xlu1 %v237_v2, %s1030_s6  ;;  %434 = vrot.lane.b32.xlu0 %v1217_v0, %s1030_s6 }
  0x87   : > { %466 = vrot.lane.b32.xlu1 %v236_v3, %s1031_s25  ;;  %464 = vrot.lane.b32.xlu0 %v234_v1, %s1031_s25 }
  0x8b   : > { %470 = vrot.lane.b32.xlu1 %v237_v2, %s1031_s25  ;;  %468 = vrot.lane.b32.xlu0 %v1217_v0, %s1031_s25 }
  0x8f   : > { %500 = vrot.lane.b32.xlu1 %v236_v3, %s1032_s30  ;;  %498 = vrot.lane.b32.xlu0 %v234_v1, %s1032_s30 }
  0x93   : > { %504 = vrot.lane.b32.xlu1 %v237_v2, %s1032_s30  ;;  %502 = vrot.lane.b32.xlu0 %v1217_v0, %s1032_s30  ;;  %s686_s30 = sshll.u32 %s1297_s5, 4  ;;  %s1301_s30 = int_to_ptr.vmem [resolvable:$true] %s686_s30 }
  0x94   : > { %s948_s29 = scalar_lea.vmem %s1301_s30, 1024  ;;  %p955_p4 = scmp.lt.s32.totalorder %s1301_s30, %s953_s23 }
  0x95   : > { %p949_p8 = scmp.ne.s32.totalorder %s1301_s30, %s948_s29  ;;  %p956_p0 = scmp.lt.s32.totalorder %s954_s9, %s948_s29 }
  0x97   : > { %565 = vperm.xlu1 %883, %v555_v20   ;;  %560 = vperm.xlu0 %882, %v554_v21   ;;  %v364_v20 = vrot.slane %v355_v12, %v1225_v6  ;;  %p950_p10 = pnand %p949_p8, %p1381_p9  ;;  %p957_p5 = por %p956_p0, %p955_p4 }
  0x99   : > { %p951_p1 = pneg %p950_p10 }
  0x9b   : > { %570 = vperm.xlu1 %883, %v556_v22   ;;  %575 = vperm.xlu0 %882, %v557_v23   ;;  %p958_p11 = pnand %p957_p5, %p951_p1 }
  0xc9   : > { %v243_v26 = vpop.permute.xlu1 %242  ;;  %v239_v27 = vpop.permute.xlu0 %238 }
  0xca   : > { %v249_v30 = vsel %vm248_vm1, %v239_v27, %v243_v26  ;;  %v251_v31 = vsel %vm248_vm1, %v243_v26, %v239_v27 }
  0xcb   : > { %v265_v36 = vmul.f32 %v258_v28, %v251_v31  ;;  %v266_v37 = vmul.f32 %v262_v29, %v249_v30 }
  0xcd   : > { %v245_v32 = vpop.permute.xlu1 %244  ;;  %v241_v33 = vpop.permute.xlu0 %240 }
  0xce   : > { %v250_v34 = vsel %vm248_vm1, %v241_v33, %v245_v32  ;;  %v252_v35 = vsel %vm248_vm1, %v245_v32, %v241_v33  ;;  %v410_v32 = vld [vmem:[#allocation6 + $0x5] ss:$8 sm:$0x3] }
  0xcf   : > { %v267_v38 = vmul.f32 %v258_v28, %v252_v35  ;;  %v268_v39 = vmul.f32 %v262_v29, %v250_v34 }
  0xd1   : > { %v276_v41 = vpop.permute.xlu1 %275  ;;  %v274_v42 = vpop.permute.xlu0 %273  ;;  %v270_v43 = vpack.c.bf16 %v268_v39, %v266_v37  ;;  %v269_v44 = vpack.c.bf16 %v267_v38, %v265_v36  ;;  %v415_v37 = vrot.slane %v410_v32, %v1227_v7  ;;  %v419_v38 = vrot.slane %v410_v32, %v1225_v6 }
  0xd3   : > { %603 = vmatprep.subr.bf16.mxu0 %v270_v43  ;;  %793 = vmatprep.subr.bf16.mxu1 %v270_v43 }
  0xd4   : > { %604 = vmatpush1.bf16.msra.mxu0 %v269_v44  ;;  %802 = vmatpush1.bf16.msra.mxu1 %v269_v44 }
  0xd5   : > { %v280_v47 = vpop.permute.xlu1 %279  ;;  %v278_v48 = vpop.permute.xlu0 %277 }
  0xd6   : > { %v283_v49 = vsel %vm281_vm2, %v276_v41, %v280_v47  ;;  %v285_v50 = vsel %vm281_vm2, %v280_v47, %v276_v41  ;;  %v282_v51 = vsel %vm281_vm2, %v274_v42, %v278_v48  ;;  %v284_v52 = vsel %vm281_vm2, %v278_v48, %v274_v42 }
  0xd7   : > { %v301_v53 = vmul.f32 %v292_v45, %v285_v50  ;;  %v302_v54 = vmul.f32 %v296_v46, %v283_v49  ;;  %v299_v55 = vmul.f32 %v292_v45, %v284_v52  ;;  %v300_v56 = vmul.f32 %v296_v46, %v282_v51  ;;  %v444_v49 = vld [vmem:[#allocation6 + $0x6] ss:$8 sm:$0x3] }
  0xd9   : > { %v310_v58 = vpop.permute.xlu1 %309  ;;  %v308_v59 = vpop.permute.xlu0 %307  ;;  %v304_v60 = vpack.c.bf16 %v302_v54, %v300_v56  ;;  %v303_v61 = vpack.c.bf16 %v301_v53, %v299_v55  ;;  %v453_v54 = vrot.slane %v444_v49, %v1225_v6 }
  0xdb   : > { %605 = vmatprep.subr.bf16.mxu0 %v304_v60  ;;  %794 = vmatprep.subr.bf16.mxu1 %v304_v60 }
  0xdc   : > { %606 = vmatpush1.bf16.msra.mxu0 %v303_v61  ;;  %803 = vmatpush1.bf16.msra.mxu1 %v303_v61 }
  0xdd   : > { %v314_v0 = vpop.permute.xlu1 %313  ;;  %v312_v1 = vpop.permute.xlu0 %311 }
  0xde   : > { %v317_v2 = vsel %vm315_vm3, %v310_v58, %v314_v0  ;;  %v319_v3 = vsel %vm315_vm3, %v314_v0, %v310_v58  ;;  %v316_v4 = vsel %vm315_vm3, %v308_v59, %v312_v1  ;;  %v318_v5 = vsel %vm315_vm3, %v312_v1, %v308_v59  ;;  %v478_v0 = vld [vmem:[#allocation6 + $0x7] ss:$8 sm:$0x3] }
  0xdf   : > { %v335_v8 = vmul.f32 %v326_v62, %v319_v3  ;;  %v336_v9 = vmul.f32 %v330_v63, %v317_v2  ;;  %v333_v10 = vmul.f32 %v326_v62, %v318_v5  ;;  %v334_v11 = vmul.f32 %v330_v63, %v316_v4 }
  0xe0   : > { %v483_v5 = vrot.slane %v478_v0, %v1227_v7 }
  0xe1   : > { %v344_v13 = vpop.permute.xlu1 %343  ;;  %v342_v14 = vpop.permute.xlu0 %341  ;;  %v338_v17 = vpack.c.bf16 %v336_v9, %v334_v11  ;;  %v337_v18 = vpack.c.bf16 %v335_v8, %v333_v10  ;;  %v487_v8 = vrot.slane %v478_v0, %v1225_v6 }
  0xe3   : > { %607 = vmatprep.subr.bf16.mxu0 %v338_v17  ;;  %795 = vmatprep.subr.bf16.mxu1 %v338_v17 }
  0xe4   : > { %608 = vmatpush1.bf16.msra.mxu0 %v337_v18  ;;  %804 = vmatpush1.bf16.msra.mxu1 %v337_v18 }
  0xe5   : > { %v348_v21 = vpop.permute.xlu1 %347  ;;  %v346_v22 = vpop.permute.xlu0 %345 }
  0xe6   : > { %v351_v23 = vsel %vm349_vm4, %v344_v13, %v348_v21  ;;  %v353_v25 = vsel %vm349_vm4, %v348_v21, %v344_v13  ;;  %v350_v26 = vsel %vm349_vm4, %v342_v14, %v346_v22  ;;  %v352_v27 = vsel %vm349_vm4, %v346_v22, %v342_v14  ;;  %v512_v21 = vld [vmem:[#allocation6 + $0x10] ss:$8 sm:$0x3] }
  0xe7   : > { %v369_v28 = vmul.f32 %v360_v19, %v353_v25  ;;  %v370_v29 = vmul.f32 %v364_v20, %v351_v23  ;;  %v367_v30 = vmul.f32 %v360_v19, %v352_v27  ;;  %v368_v31 = vmul.f32 %v364_v20, %v350_v26 }
  0xe8   : > { %v517_v27 = vrot.slane %v512_v21, %v1227_v7 }
  0xe9   : > { %v399_v33 = vpop.permute.xlu1 %398  ;;  %v397_v34 = vpop.permute.xlu0 %396  ;;  %v372_v35 = vpack.c.bf16 %v370_v29, %v368_v31  ;;  %v371_v36 = vpack.c.bf16 %v369_v28, %v367_v30  ;;  %v521_v28 = vrot.slane %v512_v21, %v1225_v6  ;;  %v884_v6 = vld [vmem:[%s1360_s1] ss:$8 sps:$4 sm:$0xff]  }
  0xeb   : > { %609 = vmatprep.subr.bf16.mxu0 %v372_v35  ;;  %796 = vmatprep.subr.bf16.mxu1 %v372_v35 }
  0xec   : > { %610 = vmatpush1.bf16.msra.mxu0 %v371_v36  ;;  %805 = vmatpush1.bf16.msra.mxu1 %v371_v36 }
  0xed   : > { %v403_v39 = vpop.permute.xlu1 %402  ;;  %v401_v40 = vpop.permute.xlu0 %400  ;;  %611 = vmatprep.subr.bf16.mxu0 %v1233_v15  ;;  %797 = vmatprep.subr.bf16.mxu1 %v1233_v15  ;;  %v449_v15 = vrot.slane %v444_v49, %v1227_v7  ;;  %v887_v7 = vld [vmem:[%s1360_s1 + $0x10] ss:$8 sps:$4 sm:$0xff]  }
  0xee   : > { %v406_v41 = vsel %vm404_vm5, %v399_v33, %v403_v39  ;;  %v408_v42 = vsel %vm404_vm5, %v403_v39, %v399_v33  ;;  %v405_v43 = vsel %vm404_vm5, %v397_v34, %v401_v40  ;;  %v407_v44 = vsel %vm404_vm5, %v401_v40, %v397_v34 }
  0xef   : > { %v424_v45 = vmul.f32 %v415_v37, %v406_v41  ;;  %v425_v46 = vmul.f32 %v419_v38, %v408_v42  ;;  %v422_v47 = vmul.f32 %v415_v37, %v405_v43  ;;  %v423_v48 = vmul.f32 %v419_v38, %v407_v44 }
  0xf0   : > { %612 = vmatpush1.bf16.msra.mxu0 %v1235_v16  ;;  %806 = vmatpush1.bf16.msra.mxu1 %v1235_v16 }
  0xf1   : > { %v433_v50 = vpop.permute.xlu1 %432  ;;  %v431_v51 = vpop.permute.xlu0 %430  ;;  %v427_v52 = vpack.c.bf16 %v425_v46, %v423_v48  ;;  %v426_v53 = vpack.c.bf16 %v424_v45, %v422_v47 }
  0xf3   : > { %613 = vmatprep.subr.bf16.mxu0 %v427_v52  ;;  %798 = vmatprep.subr.bf16.mxu1 %v427_v52 }
  0xf4   : > { %614 = vmatpush1.bf16.msra.mxu0 %v426_v53  ;;  %807 = vmatpush1.bf16.msra.mxu1 %v426_v53 }
  0xf5   : > { %v437_v55 = vpop.permute.xlu1 %436  ;;  %v435_v56 = vpop.permute.xlu0 %434 }
  0xf6   : > { %v440_v57 = vsel %vm438_vm6, %v433_v50, %v437_v55  ;;  %v442_v58 = vsel %vm438_vm6, %v437_v55, %v433_v50  ;;  %v439_v16 = vsel %vm438_vm6, %v431_v51, %v435_v56  ;;  %v441_v59 = vsel %vm438_vm6, %v435_v56, %v431_v51 }
  0xf7   : > { %v458_v60 = vmul.f32 %v449_v15, %v440_v57  ;;  %v459_v61 = vmul.f32 %v453_v54, %v442_v58  ;;  %v456_v62 = vmul.f32 %v449_v15, %v439_v16  ;;  %v457_v63 = vmul.f32 %v453_v54, %v441_v59 }
  0xf9   : > { %v467_v1 = vpop.permute.xlu1 %466  ;;  %v465_v2 = vpop.permute.xlu0 %464  ;;  %v461_v3 = vpack.c.bf16 %v459_v61, %v457_v63  ;;  %v460_v4 = vpack.c.bf16 %v458_v60, %v456_v62 }
  0xfb   : > { %615 = vmatprep.subr.bf16.mxu0 %v461_v3  ;;  %799 = vmatprep.subr.bf16.mxu1 %v461_v3 }
  0xfc   : > { %616 = vmatpush1.bf16.msra.mxu0 %v460_v4  ;;  %808 = vmatpush1.bf16.msra.mxu1 %v460_v4 }
  0xfd   : > { %v471_v9 = vpop.permute.xlu1 %470  ;;  %v469_v10 = vpop.permute.xlu0 %468 }
  0xfe   : > { %v474_v11 = vsel %vm472_vm7, %v467_v1, %v471_v9  ;;  %v476_v12 = vsel %vm472_vm7, %v471_v9, %v467_v1  ;;  %v473_v13 = vsel %vm472_vm7, %v465_v2, %v469_v10  ;;  %v475_v14 = vsel %vm472_vm7, %v469_v10, %v465_v2 }
  0xff   : > { %v492_v17 = vmul.f32 %v483_v5, %v474_v11  ;;  %v493_v18 = vmul.f32 %v487_v8, %v476_v12  ;;  %v490_v19 = vmul.f32 %v483_v5, %v473_v13  ;;  %v491_v20 = vmul.f32 %v487_v8, %v475_v14 }
 0x101   : > { %v501_v22 = vpop.permute.xlu1 %500  ;;  %v499_v23 = vpop.permute.xlu0 %498  ;;  %v495_v25 = vpack.c.bf16 %v493_v18, %v491_v20  ;;  %v494_v26 = vpack.c.bf16 %v492_v17, %v490_v19 }
 0x103   : > { %617 = vmatprep.subr.bf16.mxu0 %v495_v25  ;;  %800 = vmatprep.subr.bf16.mxu1 %v495_v25 }
 0x104   : > { %618 = vmatpush1.bf16.msra.mxu0 %v494_v26  ;;  %809 = vmatpush1.bf16.msra.mxu1 %v494_v26 }
 0x105   : > { %v505_v29 = vpop.permute.xlu1 %504  ;;  %v503_v30 = vpop.permute.xlu0 %502 }
 0x106   : > { %v508_v31 = vsel %vm506_vm8, %v501_v22, %v505_v29  ;;  %v510_v32 = vsel %vm506_vm8, %v505_v29, %v501_v22  ;;  %v507_v33 = vsel %vm506_vm8, %v499_v23, %v503_v30  ;;  %v509_v34 = vsel %vm506_vm8, %v503_v30, %v499_v23 }
 0x107   : > { %v526_v35 = vmul.f32 %v517_v27, %v508_v31  ;;  %v527_v36 = vmul.f32 %v521_v28, %v510_v32  ;;  %v524_v37 = vmul.f32 %v517_v27, %v507_v33  ;;  %v525_v38 = vmul.f32 %v521_v28, %v509_v34 }
 0x109   : > { %v529_v39 = vpack.c.bf16 %v527_v36, %v525_v38  ;;  %v528_v40 = vpack.c.bf16 %v526_v35, %v524_v37 }
 0x10b   : > { %619 = vmatprep.subr.bf16.mxu0 %v529_v39  ;;  %801 = vmatprep.subr.bf16.mxu1 %v529_v39 }
 0x10c   : > { %620 = vmatpush1.bf16.msra.mxu0 %v528_v40  ;;  %810 = vmatpush1.bf16.msra.mxu1 %v528_v40 }
 0x10f   : > { %636 = vmatmul.mubr.bf16.vlgmr.msra.gmra.mrb[0].mxu0 %v884_v6  ;;  %646 = vmatmul.mubr.bf16.vlgmr.msra.gmra.mrb[0].mxu1 %v887_v7 }
 0x116   : > { %v566_v24 = vpop.permute.xlu1 %565  ;;  %v561_v41 = vpop.permute.xlu0 %560 }
 0x11a   : > { %v571_v42 = vpop.permute.xlu1 %570  ;;  %v576_v43 = vpop.permute.xlu0 %575 }
 0x1e2   : > { %v637_v44 = vpop.f32.mrb[0].mxu0  ;;  %v647_v45 = vpop.f32.mrb[0].mxu1 }
 0x1e3   : > { %v638_v46 = vadd.f32 %v637_v44, %v561_v41  ;;  %v648_v47 = vadd.f32 %v647_v45, %v571_v42  ;;  %v639_v48 = vpop.f32.mrb[1].mxu0  ;;  %v649_v49 = vpop.f32.mrb[1].mxu1 }
 0x1e4   : > { %v640_v50 = vadd.f32 %v639_v48, %v561_v41  ;;  %v650_v51 = vadd.f32 %v649_v49, %v571_v42  ;;  %v641_v52 = vpop.f32.mrb[2].mxu0  ;;  %v651_v53 = vpop.f32.mrb[2].mxu1 }
 0x1e5   : > { %v656_v15 = vmax.f32 %v638_v46, 0.0  ;;  %v660_v54 = vmax.f32 %v648_v47, 0.0  ;;  %v642_v55 = vadd.f32 %v641_v52, %v566_v24  ;;  %v652_v56 = vadd.f32 %v651_v53, %v576_v43  ;;  %v643_v57 = vpop.f32.mrb[3].mxu0  ;;  %v653_v58 = vpop.f32.mrb[3].mxu1 }
 0x1e6   : > { %v657_v16 = vmax.f32 %v640_v50, 0.0  ;;  %v661_v59 = vmax.f32 %v650_v51, 0.0  ;;  %v644_v60 = vadd.f32 %v643_v57, %v566_v24  ;;  %v654_v61 = vadd.f32 %v653_v58, %v576_v43 }
 0x1e7   : > { %664 = vst [vmem:[%s1297_s5] sm:$0xff] %v656_v15  ;;  %668 = vst [vmem:[%s1297_s5 + $0x20] sm:$0xff] %v660_v54  ;;  %v658_v62 = vmax.f32 %v642_v55, 0.0  ;;  %v662_v63 = vmax.f32 %v652_v56, 0.0 }
 0x1e8   : > { %665 = vst [vmem:[%s1297_s5 + $0x8] sm:$0xff] %v657_v16  ;;  %669 = vst [vmem:[%s1297_s5 + $0x28] sm:$0xff] %v661_v59  ;;  %v659_v0 = vmax.f32 %v644_v60, 0.0  ;;  %v663_v1 = vmax.f32 %v654_v61, 0.0 }
 0x1e9   : > { %666 = vst [vmem:[%s1297_s5 + $0x10] sm:$0xff] %v658_v62  ;;  %670 = vst [vmem:[%s1297_s5 + $0x30] sm:$0xff] %v662_v63 }
 0x1ea   : > { %667 = vst [vmem:[%s1297_s5 + $0x18] sm:$0xff] %v659_v0  ;;  %671 = vst [vmem:[%s1297_s5 + $0x38] sm:$0xff] %v663_v1 }
 0x1eb   : > { %961 = shalt.err (!%p958_p11)
}
 0x1ec   : > { %s962_s6 = scalar_lea.hbm %s1308_s12, 1024  ;;  %s966_s7 = scalar_lea.hbm %s1363_s4, 2048 }
 0x1ed   : > { %p963_p13 = scmp.ne.s32.totalorder %s1308_s12, %s962_s6  ;;  %p967_p12 = scmp.lt.u32.totalorder %s1308_s12, %s1363_s4 }
 0x1ee   : > { %p968_p7 = scmp.lt.u32.totalorder %s966_s7, %s962_s6  ;;  %p970_p8 = scmp.lt.u32.totalorder %s962_s6, %s1308_s12 }
 0x1ef   : > { %p964_p2 = pnand %p963_p13, %p1381_p9 }
 0x1f0   : > { %p969_p3 = por %p968_p7, %p967_p12 }
 0x1f1   : > { %p965_p6 = pneg %p964_p2 }
 0x1f2   : > { %p971_p10 = por %p970_p8, %p969_p3 }
 0x1f4   : > { %p972_p1 = pnand %p971_p10, %p965_p6 }
 0x1f6   : > { %975 = shalt.err (!%p972_p1)
}
 0x1f7   : > { %s1035_s20 = smov 256   ;;  %s1036_s19 = smov 512  }
 0x1f8   : > { %817 = dma.vmem_to_hbm [thread:$0]  (%p1381_p9), %s1301_s30, 1024, %s1308_s12, %s673_s13, %s1035_s20, %s1036_s19, %s1026_s22  }
 0x1f9 PF: > { %s701_s11 = sand.u32 1, %s1006_s15   ;;  %p1382_p4 = scmp.ne.s32.totalorder %s1371_s28, 0 }
 0x1fa   : > { %p1383_p0 = scmp.ge.s32.totalorder %s1018_s18, 2  ;;  %s702_s29 = scalar_lea.sflag [#allocation5], %s701_s11 }
 0x1fc   : > { %p828_p5 = pnand %p1383_p0, %p1382_p4 }
 0x1fe   : > { %1001 = dma.done.wait (!%p828_p5), %s702_s29, 1024  }
 0x1ff   : > { %1003 = vsyncadd (!%p828_p5), %s702_s29, 4294966272  ;;  %p18_p11 = scmp.ge.s32.totalorder %s1087_s21, 4   ;;  %s1384_s15 = smov %s1010_s16 }
 0x200   : > { %s1385_s16 = smov %s1014_s17  ;;  %s1386_s17 = smov %s1099_s24 }
 0x201   : > { %s1387_s18 = smov %s1087_s21  ;;  %20 = sbr.rel (!%p18_p11) target bundleno = 6 (0x6), region = 93 }
 0x208   :  { %707 = vsyncpa [#allocation4], 1 }
 0x209   :  { %709 = vsyncpa [#allocation4 + $0x1], 1 }
 0x20a   :  { %710 = vsyncpa [#allocation7], 1 }
 0x20b   :  { %711 = vsyncpa [#allocation5], 1 }
 0x20c   :  { %713 = vsyncpa [#allocation5 + $0x1], 1 }

</bundles_post_ra>
